<compile_context>
chip_gen: v7x
topology: tpu7x:2x2x1
jax: 0.10.0
libtpu: 0.0.40
codegen_flags: <defaults>
</compile_context>

<pallas_src>
import functools

import jax
import jax.numpy as jnp
from jax.experimental import pallas as pl
from jax.experimental.pallas import tpu as pltpu

EPS = 1e-5  # nn.LayerNorm default


# --------------------------------------------------------------------------- #
# Small static helpers (all run at trace time on Python ints).
# --------------------------------------------------------------------------- #
def _round_up(x, m):
    return (x + m - 1) // m * m


def _row_align(*dtypes):
    """Sublane-packing granularity: 8 rows for 32-bit, 16 for bf16, 32 for 8-bit."""
    return max(max(8, 32 // jnp.dtype(dt).itemsize) for dt in dtypes)


def _vmem_capacity_bytes():
    """Per-TensorCore VMEM capacity (128 MiB on v5e/v6e, 64 MiB on v7x)."""
    try:
        return int(pltpu.get_tpu_info().vmem_capacity_bytes)
    except Exception:
        return 64 << 20  # conservative fallback (v7x per-core VMEM)


def _max_rows_for_cols(tn, D, budget, x_item, out_item, w_item):
    """Max row-tile size whose estimated VMEM footprint fits `budget` for a
    (D, tn) weight column tile.  BlockSpec double-buffers every in/out block."""
    fixed = (2 * D * tn * w_item        # W column tile, double-buffered
             + 2 * tn * 4               # f32 bias tile, double-buffered
             + 2 * D * 4)               # gamma, double-buffered
    per_row = (2 * D * x_item           # x tile, double-buffered
               + 2 * tn * out_item      # out tile, double-buffered
               + D * w_item             # y scratch (single buffer)
               + 3 * D * 4              # f32 LayerNorm temporaries
               + tn * 4)                # f32 matmul accumulator
    return (budget - fixed) // max(per_row, 1)


def _pick_block_cols(d_out_p, D, rows, budget, x_item, out_item, w_item, row_align):
    """Prefer the whole padded W resident as a single column tile (single-pass x
    and W HBM traffic, LayerNorm done once per row).  Fall back to 256-aligned
    divisors (matches the 2x256^2 MXU on v6e/v7x), then 128."""
    candidates = [d_out_p]
    for c in (2048, 1024, 512, 256, 128):
        if c < d_out_p and d_out_p % c == 0:
            candidates.append(c)
    want_rows = min(max(256, row_align), max(rows, row_align))
    for tn in candidates:
        if _max_rows_for_cols(tn, D, budget, x_item, out_item, w_item) >= want_rows:
            return tn
    return candidates[-1]


def _pick_block_rows(rows, row_align, tm_max):
    """Row-tile size: multiple of `row_align`, <= tm_max, preferring (a) at least
    two row tiles so both v7x TensorCores get work on the 'parallel' axis and
    (b) a size that minimizes (ideally eliminates) activation row padding."""
    tm_max = min(tm_max, _round_up(rows, row_align))
    if rows >= 2 * row_align:                      # keep >= 2 row tiles (megacore)
        tm_max = min(tm_max, max(row_align, (rows // 2) // row_align * row_align))
    tm_max = max(row_align, tm_max // row_align * row_align)

    choice = tm_max
    best_pad = (-rows) % tm_max
    lo = max(row_align, tm_max // 2)
    tm = tm_max
    while tm >= lo:
        pad = (-rows) % tm
        if pad < best_pad:
            best_pad, choice = pad, tm
            if pad == 0:
                break
        tm -= row_align
    return choice


# --------------------------------------------------------------------------- #
# Kernel
# --------------------------------------------------------------------------- #
def _prenorm_linear_kernel(x_ref, gamma_ref, w_ref, b_ref, o_ref, y_ref):
    """Grid (i=row tile [parallel], j=out-col tile [arbitrary]).

    At j == 0 the LayerNorm (f32 stats, biased variance, beta folded into the
    bias) is computed once for the row tile and cached in VMEM scratch in W's
    dtype; every j then only runs the MXU matmul + bias add."""
    @pl.when(pl.program_id(1) == 0)
    def _():
        x = x_ref[...].astype(jnp.float32)                    # (tm, D)
        mean = jnp.mean(x, axis=-1, keepdims=True)            # XLU reduce
        xc = x - mean
        var = jnp.mean(xc * xc, axis=-1, keepdims=True)       # biased variance
        inv = jax.lax.rsqrt(var + EPS)                        # EUP
        y = (xc * inv) * gamma_ref[...].astype(jnp.float32)   # beta folded into bias
        y_ref[...] = y.astype(y_ref.dtype)                    # MXU input dtype

    out = jnp.dot(y_ref[...], w_ref[...],
                  preferred_element_type=jnp.float32)         # (tm, tn) f32 acc
    o_ref[...] = (out + b_ref[...]).astype(o_ref.dtype)


# --------------------------------------------------------------------------- #
# One-time parameter prep (hoisted out of the per-call path).
# --------------------------------------------------------------------------- #
def prepare_prenorm_linear_params(gamma, beta, w, b):
    """Pad D_out to a multiple of 128 (lane-dense output stores) and fold the
    LayerNorm beta into the linear bias:
        (xn * gamma + beta) @ W + b == (xn * gamma) @ W + (beta @ W + b)."""
    D, d_out = w.shape
    d_out_p = _round_up(d_out, 128)
    b_eff = (beta.astype(jnp.float32) @ w.astype(jnp.float32)
             + b.astype(jnp.float32))                          # keep bias in f32
    if d_out_p != d_out:
        w = jnp.pad(w, ((0, 0), (0, d_out_p - d_out)))
        b_eff = jnp.pad(b_eff, (0, d_out_p - d_out))
    return gamma.reshape(1, D), w, b_eff.reshape(1, d_out_p)


# --------------------------------------------------------------------------- #
# Wrapper
# --------------------------------------------------------------------------- #
@functools.partial(jax.jit,
                   static_argnames=("d_out", "block_rows", "block_cols"))
def prenorm_linear(x, gamma2, w_p, b2, *, d_out, block_rows=None, block_cols=None):
    """x: (B, N, D); gamma2: (1, D); w_p: (D, D_out_padded); b2: (1, D_out_padded) f32."""
    B, N, D = x.shape
    d_out_p = w_p.shape[1]
    rows = B * N
    out_dtype = x.dtype
    x2 = x.reshape(rows, D)

    x_item = jnp.dtype(x.dtype).itemsize
    w_item = jnp.dtype(w_p.dtype).itemsize
    out_item = jnp.dtype(out_dtype).itemsize
    row_align = _row_align(x.dtype, w_p.dtype)

    # Generation-aware VMEM sizing; always pass an explicit scoped limit
    # (defaults are only 16 MiB on v5e / 32 MiB on v6e+).
    cap = _vmem_capacity_bytes()
    budget = (cap * 2) // 5                          # ~40% for tiles, rest headroom
    vmem_limit = min((cap * 3) // 4, 96 << 20)

    if block_cols is None:
        block_cols = _pick_block_cols(d_out_p, D, rows, budget,
                                      x_item, out_item, w_item, row_align)
    assert block_cols % 128 == 0 and d_out_p % block_cols == 0

    if block_rows is None:
        tm_max = _max_rows_for_cols(block_cols, D, budget, x_item, out_item, w_item)
        tm_max = int(max(row_align, min(tm_max, 1024)))
        block_rows = _pick_block_rows(rows, row_align, tm_max)

    # Minimal row padding (only when block_rows does not divide rows).  Zero rows
    # are numerically safe through LayerNorm (rsqrt(eps) finite) and sliced off.
    pad_rows = (-rows) % block_rows
    if pad_rows:
        x2 = jnp.pad(x2, ((0, pad_rows), (0, 0)))
    rows_p = rows + pad_rows

    grid = (rows_p // block_rows, d_out_p // block_cols)

    cost = pl.CostEstimate(
        flops=2 * rows_p * D * d_out_p + 7 * rows_p * D,
        transcendentals=rows_p,
        bytes_accessed=(rows_p * D * x_item + D * d_out_p * w_item
                        + rows_p * d_out_p * out_item + D * 4 + d_out_p * 4),
    )

    out2 = pl.pallas_call(
        _prenorm_linear_kernel,
        out_shape=jax.ShapeDtypeStruct((rows_p, d_out_p), out_dtype),
        grid_spec=pltpu.PrefetchScalarGridSpec(
            num_scalar_prefetch=0,
            grid=grid,
            in_specs=[
                pl.BlockSpec((block_rows, D), lambda i, j: (i, 0)),    # x row tile
                pl.BlockSpec((1, D), lambda i, j: (0, 0)),             # gamma (resident)
                pl.BlockSpec((D, block_cols), lambda i, j: (0, j)),    # W col tile
                pl.BlockSpec((1, block_cols), lambda i, j: (0, j)),    # fused bias tile
            ],
            out_specs=pl.BlockSpec((block_rows, block_cols), lambda i, j: (i, j)),
            scratch_shapes=[pltpu.VMEM((block_rows, D), w_p.dtype)],   # cached LN(x)
        ),
        compiler_params=pltpu.CompilerParams(
            dimension_semantics=("parallel", "arbitrary"),
            vmem_limit_bytes=int(vmem_limit)),
        cost_estimate=cost,
    )(x2, gamma2, w_p, b2)

    return out2[:rows, :d_out].reshape(B, N, d_out)


# --------------------------------------------------------------------------- #
# Reference + test
# --------------------------------------------------------------------------- #
def _reference(x, gamma, beta, w, b):
    xf = x.astype(jnp.float32)
    mean = jnp.mean(xf, axis=-1, keepdims=True)
    var = jnp.mean((xf - mean) ** 2, axis=-1, keepdims=True)
    xn = (xf - mean) * jax.lax.rsqrt(var + EPS)
    y = xn * gamma + beta
    return (y @ w + b).astype(x.dtype)


if __name__ == "__main__":
    key = jax.random.PRNGKey(0)
    B, N, D, D_out = 2, 8, 32, 32

    k_x, k_g, k_b, k_w, k_bias = jax.random.split(key, 5)
    x = jax.random.normal(k_x, (B, N, D), dtype=jnp.float32)
    gamma = jax.random.normal(k_g, (D,), dtype=jnp.float32) * 0.1 + 1.0
    beta = jax.random.normal(k_b, (D,), dtype=jnp.float32) * 0.1
    # fn := Linear(D, D_out), deterministic init
    w = jax.random.normal(k_w, (D, D_out), dtype=jnp.float32) * 0.05
    b = jax.random.normal(k_bias, (D_out,), dtype=jnp.float32) * 0.05

    # One-time prep (pad W/bias, fold beta) -- not in the per-forward path.
    gamma2, w_p, b2 = prepare_prenorm_linear_params(gamma, beta, w, b)

    out = prenorm_linear(x, gamma2, w_p, b2, d_out=D_out)
    out = jax.block_until_ready(out)

    ref = _reference(x, gamma, beta, w, b)
    assert out.shape == (B, N, D_out), out.shape
    err = float(jnp.max(jnp.abs(out - ref)))
    # f32 path tolerance; a bf16 weight path would need a looser bound.
    assert err < 1e-4, err

    print("KERNEL_OK")
</pallas_src>

<mosaic_0001>
module attributes {stable_mosaic.version = 11 : i64} {
  func.func @_prenorm_linear_kernel(%arg0: i32, %arg1: i32, %arg2: memref<8x32xf32, #tpu.memory_space<vmem>>, %arg3: memref<1x32xf32, #tpu.memory_space<vmem>>, %arg4: memref<32x128xf32, #tpu.memory_space<vmem>>, %arg5: memref<1x128xf32, #tpu.memory_space<vmem>>, %arg6: memref<8x128xf32, #tpu.memory_space<vmem>>, %arg7: memref<8x32xf32, #tpu.memory_space<vmem>>) attributes {dimension_semantics = [#tpu.dimension_semantics<parallel>, #tpu.dimension_semantics<arbitrary>], iteration_bounds = array<i64: 2, 1>, scalar_prefetch = 0 : i64, scratch_operands = 1 : i64, tpu.core_type = #tpu.core_type<tc>, window_params = [{transform_indices = @transform_0, window_bounds = array<i64: 8, 32>}, {pipeline_mode = #tpu.pipeline_mode<synchronous>, transform_indices = @transform_1, window_bounds = array<i64: 1, 32>}, {transform_indices = @transform_2, window_bounds = array<i64: 32, 128>}, {transform_indices = @transform_3, window_bounds = array<i64: 1, 128>}, {transform_indices = @transform_4, window_bounds = array<i64: 8, 128>}]} {
    %c0_i32 = arith.constant 0 : i32
    %0 = arith.cmpi eq, %arg1, %c0_i32 : i32
    %1 = arith.extui %0 : i1 to i32
    %c0_i32_0 = arith.constant 0 : i32
    %2 = arith.cmpi ne, %1, %c0_i32_0 : i32
    scf.if %2 {
      %c0_8 = arith.constant 0 : index
      %c0_9 = arith.constant 0 : index
      %10 = vector.load %arg2[%c0_8, %c0_9] : memref<8x32xf32, #tpu.memory_space<vmem>>, vector<8x32xf32>
      %cst_10 = arith.constant dense<0.000000e+00> : vector<8xf32>
      %11 = vector.multi_reduction <add>, %10, %cst_10 [1] : vector<8x32xf32> to vector<8xf32>
      %12 = vector.shape_cast %11 : vector<8xf32> to vector<8x1xf32>
      %cst_11 = arith.constant 3.200000e+01 : f32
      %13 = vector.broadcast %cst_11 : f32 to vector<8x1xf32>
      %14 = arith.divf %12, %13 : vector<8x1xf32>
      %15 = vector.broadcast %14 : vector<8x1xf32> to vector<8x32xf32>
      %16 = arith.subf %10, %15 : vector<8x32xf32>
      %17 = arith.mulf %16, %16 : vector<8x32xf32>
      %cst_12 = arith.constant dense<0.000000e+00> : vector<8xf32>
      %18 = vector.multi_reduction <add>, %17, %cst_12 [1] : vector<8x32xf32> to vector<8xf32>
      %19 = vector.shape_cast %18 : vector<8xf32> to vector<8x1xf32>
      %cst_13 = arith.constant 3.200000e+01 : f32
      %20 = vector.broadcast %cst_13 : f32 to vector<8x1xf32>
      %21 = arith.divf %19, %20 : vector<8x1xf32>
      %cst_14 = arith.constant 9.99999974E-6 : f32
      %22 = vector.broadcast %cst_14 : f32 to vector<8x1xf32>
      %23 = arith.addf %21, %22 : vector<8x1xf32>
      %24 = math.rsqrt %23 : vector<8x1xf32>
      %25 = vector.broadcast %24 : vector<8x1xf32> to vector<8x32xf32>
      %26 = arith.mulf %16, %25 : vector<8x32xf32>
      %c0_15 = arith.constant 0 : index
      %c0_16 = arith.constant 0 : index
      %27 = vector.load %arg3[%c0_15, %c0_16] : memref<1x32xf32, #tpu.memory_space<vmem>>, vector<1x32xf32>
      %28 = vector.broadcast %27 : vector<1x32xf32> to vector<8x32xf32>
      %29 = arith.mulf %26, %28 : vector<8x32xf32>
      %c0_17 = arith.constant 0 : index
      %c0_18 = arith.constant 0 : index
      %30 = vector.load %arg7[%c0_17, %c0_18] : memref<8x32xf32, #tpu.memory_space<vmem>>, vector<8x32xf32>
      tpu.vector_store %arg7[%c0_17, %c0_18], %29 {strides = array<i32>} : memref<8x32xf32, #tpu.memory_space<vmem>>, vector<8x32xf32>,
    } else {
    }
    %c0 = arith.constant 0 : index
    %c0_1 = arith.constant 0 : index
    %3 = vector.load %arg7[%c0, %c0_1] : memref<8x32xf32, #tpu.memory_space<vmem>>, vector<8x32xf32>
    %c0_2 = arith.constant 0 : index
    %c0_3 = arith.constant 0 : index
    %4 = vector.load %arg4[%c0_2, %c0_3] : memref<32x128xf32, #tpu.memory_space<vmem>>, vector<32x128xf32>
    %cst = arith.constant dense<0.000000e+00> : vector<8x128xf32>
    %5 = tpu.matmul %3, %4, %cst {dimension_numbers = #tpu.dot_dimension_numbers<[1], [0], [0], [1], [0, 0, 1, 1], [], []>} : vector<8x32xf32>, vector<32x128xf32>, vector<8x128xf32> -> vector<8x128xf32>
    %c0_4 = arith.constant 0 : index
    %c0_5 = arith.constant 0 : index
    %6 = vector.load %arg5[%c0_4, %c0_5] : memref<1x128xf32, #tpu.memory_space<vmem>>, vector<1x128xf32>
    %7 = vector.broadcast %6 : vector<1x128xf32> to vector<8x128xf32>
    %8 = arith.addf %5, %7 : vector<8x128xf32>
    %c0_6 = arith.constant 0 : index
    %c0_7 = arith.constant 0 : index
    %9 = vector.load %arg6[%c0_6, %c0_7] : memref<8x128xf32, #tpu.memory_space<vmem>>, vector<8x128xf32>
    tpu.vector_store %arg6[%c0_6, %c0_7], %8 {strides = array<i32>} : memref<8x128xf32, #tpu.memory_space<vmem>>, vector<8x128xf32>,
    return
  }
  func.func @transform_0(%arg0: i32, %arg1: i32) -> (i32, i32) {
    %c0_i32 = arith.constant 0 : i32
    %c0_i32_0 = arith.constant 0 : i32
    return %arg0, %c0_i32 : i32, i32
  }
  func.func @transform_1(%arg0: i32, %arg1: i32) -> (i32, i32) {
    %c0_i32 = arith.constant 0 : i32
    %c0_i32_0 = arith.constant 0 : i32
    %c0_i32_1 = arith.constant 0 : i32
    return %c0_i32, %c0_i32_0 : i32, i32
  }
  func.func @transform_2(%arg0: i32, %arg1: i32) -> (i32, i32) {
    %c0_i32 = arith.constant 0 : i32
    %c0_i32_0 = arith.constant 0 : i32
    return %c0_i32, %arg1 : i32, i32
  }
  func.func @transform_3(%arg0: i32, %arg1: i32) -> (i32, i32) {
    %c0_i32 = arith.constant 0 : i32
    %c0_i32_0 = arith.constant 0 : i32
    return %c0_i32, %arg1 : i32, i32
  }
  func.func @transform_4(%arg0: i32, %arg1: i32) -> (i32, i32) {
    %c0_i32 = arith.constant 0 : i32
    return %arg0, %arg1 : i32, i32
  }
}

</mosaic_0001>

<bundles_post_ra>
// kernel: prenorm_linear.1
= control target key start
LH: loop header
LB: loop body
LE: loop exit
PB: predicated region body
PF: predicated region fallthrough
CT: control target
= control target key end

     0   :  { %9 = vsyncpa [#allocation4], 0  ;;  %s915_s0 = inlined_call_operand.hbm [shape: f32[16,32], index: 0, kind: input, shape index: {}]   ;;  %s916_s1 = inlined_call_operand.vmem [shape: f32[1,32], index: 1, kind: input, shape index: {}]   ;;  %s917_s2 = inlined_call_operand.hbm [shape: f32[32,128], index: 2, kind: input, shape index: {}]   ;;  %s918_s3 = inlined_call_operand.vmem [shape: f32[1,128], index: 3, kind: input, shape index: {}]   ;;  %s919_s4 = inlined_call_operand.vmem [shape: f32[16,128], index: 4, kind: output, shape index: {}]  }
   0x1   :  { %11 = vsyncpa [#allocation4 + $0x1], 0 }
   0x2   :  { %12 = vsyncpa [#allocation6], 0  ;;  %s750_s15 = smov 0   ;;  %s752_s16 = smov 0  }
   0x3   :  { %s754_s17 = smov 0   ;;  %s756_s18 = smov 0  }
   0x4   :  { %s758_s19 = smov 0   ;;  %s760_s20 = smov 0  }
   0x5 LB: > { %s492_s21 = sadd.s32 4294967295, %s716_s20   ;;  %p50_p0 = scmp.ne.s32.totalorder %s700_s16, %s696_s15  ;;  %s716_s20 = sphi %s760_s20, %s18_s20   ;;  %s712_s19 = sphi %s758_s19, %s936_s19   ;;  %s708_s18 = sphi %s756_s18, %s935_s18   ;;  %s704_s17 = sphi %s754_s17, %s934_s17   ;;  %s700_s16 = sphi %s752_s16, %s933_s16   ;;  %s696_s15 = sphi %s750_s15, %s932_s15  }
   0x6   : > { %p780_p1 = scmp.eq.s32.totalorder %s492_s21, 0  ;;  %p494_p2 = scmp.ge.s32.totalorder %s716_s20, 1 }
   0x7   : > { %p162_p3 = scmp.lt.s32.totalorder %s716_s20, 3  ;;  %s718_s25 = smov [#allocation5]  }
   0x8   : > { %s924_s22 = scalar_select %p780_p1, 1, 0 }
   0x9   : > { %p788_p4 = por %p780_p1, %p50_p0  ;;  %p792_p5 = pnand %p494_p2, %p162_p3 }
   0xa   : > { %s179_s26 = sshll.u32 %s718_s25, 4  ;;  %s30_s28 = sadd.s32 1, %s712_s19  ;;  %s180_s26 = int_to_ptr.vmem [resolvable:$true] %s179_s26 }
   0xb   : > { %s925_s23 = scalar_select %p788_p4, 1, 0 }
   0xc   : > { %s926_s24 = scalar_select %p792_p5, 1, 0 }
   0xd   : > { %p537_p6 = pneg %p792_p5  ;;  %s604_s5 = scalar_lea.hbm %s917_s2, 512 }
   0xe   : > { %p605_p8 = scmp.ne.s32.totalorder %s917_s2, %s604_s5  ;;  %p611_p12 = scmp.lt.u32.totalorder %s604_s5, %s917_s2 }
   0xf   : > { %p800_p7 = pnand %p537_p6, %p780_p1 }
  0x11   : > { %p606_p9 = pneg %p800_p7 }
  0x13   : > { %p607_p10 = pnand %p606_p9, %p605_p8 }
  0x15   : > { %p608_p11 = pneg %p607_p10 }
  0x17   : > { %p613_p13 = pnand %p611_p12, %p608_p11 }
  0x19   : > { %616 = shalt.err (!%p613_p13)
}
  0x1a   : > { %s617_s10 = scalar_lea.vmem %s180_s26, 512  ;;  %p625_p6 = scmp.lt.s32.totalorder %s180_s26, %s180_s26 }
  0x1b   : > { %p618_p0 = scmp.ne.s32.totalorder %s180_s26, %s617_s10  ;;  %p626_p1 = scmp.lt.s32.totalorder %s617_s10, %s617_s10 }
  0x1d   : > { %p620_p2 = pnand %p618_p0, %p606_p9  ;;  %p627_p4 = por %p626_p1, %p625_p6 }
  0x1f   : > { %p621_p3 = pneg %p620_p2 }
  0x21   : > { %p628_p5 = pnand %p627_p4, %p621_p3 }
  0x23   : > { %631 = shalt.err (!%p628_p5)
}
  0x24   : > { %s719_s11 = smov 128   ;;  %s720_s12 = smov 8  }
  0x25   : > { %540 = dma.hbm_to_vmem [thread:$0]  (!%p800_p7), %s917_s2, 512, %s180_s26, [#allocation6], %s719_s11, %s719_s11, %s720_s12  }
  0x26   : > { %p32_p1 = scmp.ge.s32.totalorder %s30_s28, 2  ;;  %s37_s15 = sadd.s32 1, %s704_s17 }
  0x27   : > { %p44_p4 = scmp.ne.s32.totalorder %s704_s17, %s700_s16  ;;  %p45_p5 = scmp.eq.s32.totalorder %s716_s20, 0 }
  0x28   : > { %s938_s28 = smov (%p32_p1, %s30_s28), 0  ;;  %p546_p9 = scmp.lt.s32.totalorder %s716_s20, 2 }
  0x29   : > { %p46_p8 = por %p45_p5, %p44_p4  ;;  %s34_s21 = ssub.s32 %s712_s19, %s938_s28 }
  0x2a   : > { %s199_s25 = sand.u32 1, %s704_s17   ;;  %p35_p10 = scmp.eq.s32.totalorder %s34_s21, 0 }
  0x2b   : > { %s498_s29 = sshll.u32 %s199_s25, 3  ;;  %s499_s30 = sshll.u32 %s712_s19, 7 }
  0x2c   : > { %s833_s5 = scalar_select %p35_p10, %s704_s17, %s37_s15  }
  0x2d   : > { %s838_s26 = scalar_lea.hbm %s915_s0, %s499_s30  ;;  %s203_s7 = scalar_lea.vmem [#allocation3], %s498_s29 }
  0x2e   : > { %s210_s8 = sshll.u32 %s203_s7, 4  ;;  %p840_p7 = pnand %p546_p9, %p46_p8  ;;  %s844_s8 = int_to_ptr.vmem [resolvable:$true] %s210_s8 }
  0x2f   : > { %s200_s10 = scalar_lea.sflag [#allocation4], %s199_s25  ;;  %s632_s11 = scalar_lea.hbm %s838_s26, 128 }
  0x30   : > { %p633_p11 = scmp.ne.s32.totalorder %s838_s26, %s632_s11  ;;  %p634_p12 = pneg %p840_p7 }
  0x31   : > { %s637_s14 = scalar_lea.hbm %s915_s0, 256  ;;  %p638_p2 = scmp.lt.u32.totalorder %s838_s26, %s915_s0 }
  0x32   : > { %p635_p13 = pnand %p634_p12, %p633_p11  ;;  %p639_p3 = scmp.lt.u32.totalorder %s637_s14, %s632_s11 }
  0x33   : > { %p641_p1 = scmp.lt.u32.totalorder %s632_s11, %s838_s26 }
  0x34   : > { %p636_p0 = pneg %p635_p13  ;;  %p640_p6 = por %p639_p3, %p638_p2 }
  0x36   : > { %p642_p4 = por %p641_p1, %p640_p6 }
  0x38   : > { %p643_p5 = pnand %p642_p4, %p636_p0 }
  0x3a   : > { %646 = shalt.err (!%p643_p5)
}
  0x3b   : > { %s647_s25 = scalar_lea.vmem %s844_s8, 128  ;;  %s721_s29 = smov [#allocation3]  }
  0x3c   : > { %p648_p8 = scmp.ne.s32.totalorder %s844_s8, %s647_s25  ;;  %s652_s30 = sshll.u32 %s721_s29, 4  ;;  %s653_s30 = int_to_ptr.vmem [resolvable:$false] %s652_s30 }
  0x3d   : > { %s654_s27 = scalar_lea.vmem %s653_s30, 256  ;;  %p655_p11 = scmp.lt.s32.totalorder %s844_s8, %s653_s30 }
  0x3e   : > { %p650_p9 = pnand %p648_p8, %p634_p12  ;;  %p656_p13 = scmp.lt.s32.totalorder %s654_s27, %s647_s25 }
  0x40   : > { %p651_p10 = pneg %p650_p9  ;;  %p657_p2 = por %p656_p13, %p655_p11 }
  0x42   : > { %p658_p3 = pnand %p657_p2, %p651_p10 }
  0x44   : > { %661 = shalt.err (!%p658_p3)
}
  0x45   : > { %544 = dma.hbm_to_vmem [thread:$0]  (!%p840_p7), %s838_s26, 128, %s844_s8, %s200_s10  }
  0x46   : > { %p929_p0 = scmp.ne.s32.totalorder %s926_s24, 0 }
  0x47   : > { %s221_s6 = sand.u32 (!%p929_p0), 1, %s700_s16   ;;  %p930_p12 = scmp.ne.s32.totalorder (!%p929_p0), %s925_s23, 0 }
  0x48   : > { %219 = sbr.rel (%p929_p0) target bundleno = 618 (0x26a), region = 36  ;;  %s501_s7 = sshll.u32 (!%p929_p0), %s221_s6, 3 }
  0x49   : > { %s222_s11 = scalar_lea.sflag (!%p929_p0), [#allocation4], %s221_s6  ;;  %s225_s12 = scalar_lea.vmem (!%p929_p0), [#allocation3], %s501_s7 }
  0x4f   : > { %687 = dma.done.wait (%p930_p12), %s222_s11, 128  }
  0x50   : > { %689 = vsyncadd (%p930_p12), %s222_s11, 4294967168  ;;  %p931_p6 = scmp.ne.s32.totalorder %s924_s22, 0 }
  0x52   : > { %691 = dma.done.wait (%p931_p6), [#allocation6], 512  }
  0x53   : > { %693 = vsyncadd (%p931_p6), [#allocation6], 4294966784  ;;  %vm274_vm0 = vcmask 261120   ;;  %v273_v0 = vld [vmem:[%s225_s12] sm:$0xff]  ;;  %v299_v7 = vld [vmem:[#allocation5] sm:$0xff]  ;;  %v722_v10 = vmov 0.0|0.0  }
  0x54   : > { %v275_v1 = vsel %vm274_vm0, %v273_v0, 0.0  ;;  %v300_v8 = vld [vmem:[#allocation5 + $0x8] sm:$0xff]  ;;  %525 = vmatprep.subr.bf16.mxu0 %v722_v10  ;;  %v301_v11 = vld [vmem:[#allocation5 + $0x10] sm:$0xff]  ;;  %v302_v12 = vld [vmem:[#allocation5 + $0x18] sm:$0xff]  ;;  %vm723_vm1 = vmmov 0   ;;  %v724_v14 = vmov 0.0  }
  0x55   : > { %276 = vadd.xlane.f32.xlu0 %v275_v1  ;;  %v526_v9 = vpack.c.bf16 %v300_v8, %v299_v7  ;;  %v529_v13 = vpack.c.bf16 %v302_v12, %v301_v11  ;;  %522 = vmatprep.mubr.msk.f32.mxu0 %vm723_vm1, %v724_v14  ;;  %v504_v19 = vld [vmem:[%s916_s1] ss:$0 sm:$0xff]  ;;  %p262_p7 = scmp.lt.s32.totalorder %s708_s18, 1 }
  0x56   : > { %v505_v23 = vld [vmem:[%s918_s3] ss:$0 sm:$0xff] }
  0x57   : > { %527 = vmatpush3.bf16.msra.mxu0 %v526_v9  ;;  %s940_s18 = smov (!%p262_p7, %s708_s18), 1 }
  0x58   : > { %528 = vmatprep.subr.bf16.mxu0 %v722_v10  ;;  %s503_s24 = sshll.u32 %s940_s18, 3 }
  0x59   : > { %s268_s13 = scalar_lea.vmem %s919_s4, %s503_s24 }
  0x5b   : > { %530 = vmatpush3.bf16.msra.mxu0 %v529_v13 }
  0xe2   : > { %v277_v2 = vpop.xlane.xlu0 %276 }
  0xe3   : > { %v279_v3 = vmul.f32 0.03125, %v277_v2 }
  0xe5   : > { %v280_v4 = vsub.f32 %v273_v0, %v279_v3 }
  0xe7   : > { %v281_v5 = vmul.f32 %v280_v4, %v280_v4 }
  0xe9   : > { %v282_v6 = vsel %vm274_vm0, %v281_v5, 0.0 }
  0xea   : > { %283 = vadd.xlane.f32.xlu0 %v282_v6 }
 0x177   : > { %v284_v15 = vpop.xlane.xlu0 %283 }
 0x178   : > { %v285_v16 = vmul.f32 0.03125, %v284_v15 }
 0x17a   : > { %v286_v17 = vadd.f32 1e-05, %v285_v16 }
 0x17c   : > { %602 = vrsqrt.f32 %v286_v17 }
 0x186   : > { %v603_v18 = vpop.eup %602 }
 0x187   : > { %v288_v20 = vmul.f32 %v603_v18, %v280_v4 }
 0x189   : > { %v296_v21 = vmul.f32 %v504_v19, %v288_v20 }
 0x18b   : > { %297 = vst.msk [vmem:[#allocation2] sm:$0xff] %vm274_vm0, %v296_v21 }
 0x192   : > { %v298_v22 = vld [vmem:[#allocation2] sm:$0xff] }
 0x193   : > { %523 = vmatmul.mubr.msk.f32.vlgmr.msra.gmra.mrb[0].mxu0 %vm274_vm0, %v298_v22 }
 0x266   : > { %v380_v24 = vpop.f32.mrb[0].mxu0 }
 0x267   : > { %v381_v25 = vadd.f32 %v505_v23, %v380_v24  ;;  %v524_v26 = vpop.f32.mrb[1].mxu0 }
 0x269   : > { %384 = vst [vmem:[%s268_s13] sm:$0xff] %v381_v25 }
 0x26a PF: > { %s18_s20 = sadd.s32 1, %s716_s20   ;;  %s932_s15 = smov %s700_s16 }
 0x26b   : > { %p15_p1 = scmp.ge.s32.totalorder %s18_s20, 4   ;;  %s933_s16 = smov %s704_s17 }
 0x26c   : > { %s934_s17 = smov %s833_s5  ;;  %s935_s18 = smov %s712_s19 }
 0x26d   : > { %s936_s19 = smov %s938_s28  ;;  %17 = sbr.rel (!%p15_p1) target bundleno = 5 (0x5), region = 88 }
 0x274   :  { %410 = vsyncpa [#allocation4], 1 }
 0x275   :  { %412 = vsyncpa [#allocation4 + $0x1], 1 }
 0x276   :  { %413 = vsyncpa [#allocation6], 1 }

</bundles_post_ra>
